<compile_context>
chip_gen: v7x
topology: tpu7x:2x2x1
jax: 0.10.0
libtpu: 0.0.40
codegen_flags: <defaults>
</compile_context>

<pallas_src>
import functools

import jax
import jax.numpy as jnp
from jax import lax
from jax.experimental import pallas as pl
from jax.experimental.pallas import tpu as pltpu


def _round_up(x, m):
    return ((x + m - 1) // m) * m


def bert_lang_output_kernel(x_ref, w_ref, b_ref, res_ref, gamma_ref, beta_ref,
                            o_ref, *, eps, inv_h, n_sub):
    # x_ref:     (TM, I)  tile of dense input (native/bf16 dtype)
    # w_ref:     (I, H)   full dense weight, resident across the grid
    # b_ref:     (1, H)   dense bias (f32)
    # res_ref:   (TM, H)  tile of residual (input_tensor)
    # gamma_ref: (1, H)   layernorm weight (f32)
    # beta_ref:  (1, H)   layernorm bias (f32)
    # o_ref:     (TM, H)  output tile
    tm = o_ref.shape[0]
    sub = tm // n_sub

    # Hoist grid-invariant loads out of the sub-tile loop.
    w = w_ref[...]
    b = b_ref[...]
    g = gamma_ref[...]
    be = beta_ref[...]

    # TODO(synk): training-mode dropout (Bernoulli mask via pltpu.prng_random_bits)
    # not implemented; eval mode => identity.

    # Statically-unrolled sub-tiles: independent MXU/epilogue chains let the
    # scheduler overlap one sub-tile's LayerNorm with the next's matmul.
    for s in range(n_sub):
        rows = pl.ds(s * sub, sub)
        # MXU matmul in native operand dtype, f32 accumulation.
        h = jnp.dot(x_ref[rows, :], w, preferred_element_type=jnp.float32)
        h = h + b + res_ref[rows, :].astype(jnp.float32)

        # Two-pass LayerNorm (matches PyTorch; avoids E[x^2]-E[x]^2 cancellation).
        mean = jnp.sum(h, axis=-1, keepdims=True) * inv_h
        d = h - mean
        var = jnp.sum(d * d, axis=-1, keepdims=True) * inv_h
        norm = d * lax.rsqrt(var + eps)

        o_ref[rows, :] = (norm * g + be).astype(o_ref.dtype)


def bert_lang_output(hidden_states, input_tensor, w, b, gamma, beta,
                     *, eps=1e-12, tm=None, compute_dtype=jnp.bfloat16):
    """hidden_states: [B, S, I]; input_tensor: [B, S, H]; w: [I, H] (x @ w).

    compute_dtype: dtype of the MXU operands (x, w, residual).  bf16 by default
    (native MXU rate, half the HBM/VMEM traffic); pass None to keep inputs as-is.
    Accumulation and the LayerNorm epilogue are always f32.
    """
    B, S, I = hidden_states.shape
    H = input_tensor.shape[-1]
    M = B * S
    out_dtype = hidden_states.dtype

    x2 = hidden_states.reshape(M, I)
    r2 = input_tensor.reshape(M, H)
    if compute_dtype is not None:
        x2 = x2.astype(compute_dtype)
        r2 = r2.astype(compute_dtype)
        w = w.astype(compute_dtype)

    # Small per-feature params stay f32 so the epilogue is f32 on all chips.
    b2 = b.reshape(1, H).astype(jnp.float32)
    g2 = gamma.reshape(1, H).astype(jnp.float32)
    be2 = beta.reshape(1, H).astype(jnp.float32)

    in_sz = x2.dtype.itemsize
    out_sz = jnp.dtype(out_dtype).itemsize

    # Generation-aware VMEM budget: ~85% of per-core capacity
    # (v5e/v6e: 128 MiB, v7x: 64 MiB); conservative 64 MiB fallback.
    try:
        vmem_cap = int(pltpu.get_tpu_info().vmem_capacity_bytes)
    except Exception:
        vmem_cap = 64 * 1024 * 1024
    vmem_budget = int(vmem_cap * 0.85)

    def est_bytes(tm_):
        return (I * H * in_sz                 # resident weight (single buffer)
                + 3 * H * 4                   # bias / gamma / beta
                + 2 * tm_ * I * in_sz         # x tile (double-buffered)
                + 2 * tm_ * H * in_sz         # residual tile (double-buffered)
                + 2 * tm_ * H * out_sz        # output tile (double-buffered)
                + 4 * tm_ * H * 4)            # f32 epilogue temporaries

    if tm is None:
        tm_eff = 8
        cands = tuple(c for c in (1024, 512, 256, 128, 64, 32, 16, 8)
                      if c <= max(8, _round_up(M, 8)))
        for cand in cands:
            if int(est_bytes(cand) * 1.3) > vmem_budget:
                continue
            # Keep >= 2 grid blocks whenever possible so both v7x TCs get work.
            if M > 8 and pl.cdiv(M, cand) < 2:
                continue
            tm_eff = cand
            break
    else:
        tm_eff = max(8, min(_round_up(tm, 8), _round_up(M, 8)))

    n_blocks = pl.cdiv(M, tm_eff)   # partial tail block handled by Pallas masking
    n_sub = 2 if (tm_eff >= 128 and tm_eff % 16 == 0) else 1

    # TODO(synk): add a K (=I) grid axis with an f32 accumulator + pl.when
    # finalize when the resident (I,H) weight alone would blow the per-core
    # VMEM budget (very large l_intermediate_size on v7x).
    vmem_limit = int(min(max(est_bytes(tm_eff) * 1.3, 32 * 1024 * 1024),
                         vmem_budget))

    # NOTE: if H < 128 (toy configs) output stores are masked vst.msk; real
    # BERT hidden sizes (768/1024) are lane-dense and unaffected.

    kernel = functools.partial(bert_lang_output_kernel, eps=eps,
                               inv_h=float(1.0 / H), n_sub=n_sub)

    def build(single_buffer_residents):
        def const_spec(shape):
            if single_buffer_residents:
                return pl.BlockSpec(shape, lambda i: (0, 0),
                                    pipeline_mode=pl.Buffered(1))
            return pl.BlockSpec(shape, lambda i: (0, 0))

        return pl.pallas_call(
            kernel,
            out_shape=jax.ShapeDtypeStruct((M, H), out_dtype),
            grid_spec=pltpu.PrefetchScalarGridSpec(
                num_scalar_prefetch=0,
                grid=(n_blocks,),
                in_specs=[
                    pl.BlockSpec((tm_eff, I), lambda i: (i, 0)),   # x tile
                    const_spec((I, H)),                            # weight (resident)
                    const_spec((1, H)),                            # bias
                    pl.BlockSpec((tm_eff, H), lambda i: (i, 0)),   # residual tile
                    const_spec((1, H)),                            # gamma
                    const_spec((1, H)),                            # beta
                ],
                out_specs=pl.BlockSpec((tm_eff, H), lambda i: (i, 0)),
            ),
            compiler_params=pltpu.CompilerParams(
                dimension_semantics=("parallel",),
                vmem_limit_bytes=vmem_limit),
        )

    try:
        out = build(True)(x2, w, b2, r2, g2, be2)
    except Exception:
        # Fallback for jax versions without pipeline_mode=pl.Buffered support.
        out = build(False)(x2, w, b2, r2, g2, be2)

    return out.reshape(B, S, H)


def reference(hidden_states, input_tensor, w, b, gamma, beta, eps=1e-12):
    h = jnp.einsum("bsi,ih->bsh", hidden_states, w) + b
    h = h + input_tensor
    mean = jnp.mean(h, axis=-1, keepdims=True)
    var = jnp.mean((h - mean) ** 2, axis=-1, keepdims=True)
    return (h - mean) / jnp.sqrt(var + eps) * gamma + beta


if __name__ == "__main__":
    # Small config: batch=2, seq=8, l_intermediate_size=64, l_hidden_size=32.
    B, S, I, H = 2, 8, 64, 32
    key = jax.random.PRNGKey(0)
    k1, k2, k3, k4 = jax.random.split(key, 4)

    hidden_states = jax.random.normal(k1, (B, S, I), dtype=jnp.float32)
    input_tensor = jax.random.normal(k2, (B, S, H), dtype=jnp.float32)

    # Deterministic parameter init (nn.Linear-like scale; layernorm gamma=1, beta=0).
    w = jax.random.normal(k3, (I, H), dtype=jnp.float32) * (1.0 / (float(I) ** 0.5))
    b = jax.random.normal(k4, (H,), dtype=jnp.float32) * 0.01
    gamma = jnp.ones((H,), dtype=jnp.float32)
    beta = jnp.zeros((H,), dtype=jnp.float32)

    ref = reference(hidden_states, input_tensor, w, b, gamma, beta)

    # Default path: bf16 MXU operands, f32 accumulation / LayerNorm epilogue.
    out = bert_lang_output(hidden_states, input_tensor, w, b, gamma, beta)
    jax.block_until_ready(out)
    assert out.shape == (B, S, H)
    err = float(jnp.max(jnp.abs(out - ref)))
    assert err < 5e-2, err

    # Full-precision path for strict parity with the f32 reference.
    out_f32 = bert_lang_output(hidden_states, input_tensor, w, b, gamma, beta,
                               compute_dtype=None)
    jax.block_until_ready(out_f32)
    assert jnp.allclose(out_f32, ref, atol=1e-4, rtol=1e-4), float(
        jnp.max(jnp.abs(out_f32 - ref)))

    print("KERNEL_OK")
</pallas_src>

<mosaic_0001>
module attributes {stable_mosaic.version = 11 : i64} {
  func.func @bert_lang_output_kernel(%arg0: i32, %arg1: memref<8x64xbf16, #tpu.memory_space<vmem>>, %arg2: memref<64x32xbf16, #tpu.memory_space<vmem>>, %arg3: memref<1x32xf32, #tpu.memory_space<vmem>>, %arg4: memref<8x32xbf16, #tpu.memory_space<vmem>>, %arg5: memref<1x32xf32, #tpu.memory_space<vmem>>, %arg6: memref<1x32xf32, #tpu.memory_space<vmem>>, %arg7: memref<8x32xf32, #tpu.memory_space<vmem>>) attributes {dimension_semantics = [#tpu.dimension_semantics<parallel>], iteration_bounds = array<i64: 2>, scalar_prefetch = 0 : i64, scratch_operands = 0 : i64, tpu.core_type = #tpu.core_type<tc>, window_params = [{transform_indices = @transform_0, window_bounds = array<i64: 8, 64>}, {pipeline_mode = #tpu.pipeline_mode<synchronous>, transform_indices = @transform_1, window_bounds = array<i64: 64, 32>}, {pipeline_mode = #tpu.pipeline_mode<synchronous>, transform_indices = @transform_2, window_bounds = array<i64: 1, 32>}, {transform_indices = @transform_3, window_bounds = array<i64: 8, 32>}, {pipeline_mode = #tpu.pipeline_mode<synchronous>, transform_indices = @transform_4, window_bounds = array<i64: 1, 32>}, {pipeline_mode = #tpu.pipeline_mode<synchronous>, transform_indices = @transform_5, window_bounds = array<i64: 1, 32>}, {transform_indices = @transform_6, window_bounds = array<i64: 8, 32>}]} {
    %c0 = arith.constant 0 : index
    %c0_0 = arith.constant 0 : index
    %0 = vector.load %arg2[%c0, %c0_0] : memref<64x32xbf16, #tpu.memory_space<vmem>>, vector<64x32xbf16>
    %c0_1 = arith.constant 0 : index
    %c0_2 = arith.constant 0 : index
    %1 = vector.load %arg3[%c0_1, %c0_2] : memref<1x32xf32, #tpu.memory_space<vmem>>, vector<1x32xf32>
    %c0_3 = arith.constant 0 : index
    %c0_4 = arith.constant 0 : index
    %2 = vector.load %arg5[%c0_3, %c0_4] : memref<1x32xf32, #tpu.memory_space<vmem>>, vector<1x32xf32>
    %c0_5 = arith.constant 0 : index
    %c0_6 = arith.constant 0 : index
    %3 = vector.load %arg6[%c0_5, %c0_6] : memref<1x32xf32, #tpu.memory_space<vmem>>, vector<1x32xf32>
    %c0_7 = arith.constant 0 : index
    %c0_8 = arith.constant 0 : index
    %4 = vector.load %arg1[%c0_7, %c0_8] : memref<8x64xbf16, #tpu.memory_space<vmem>>, vector<8x64xbf16>
    %cst = arith.constant dense<0.000000e+00> : vector<8x32xf32>
    %5 = tpu.matmul %4, %0, %cst {dimension_numbers = #tpu.dot_dimension_numbers<[1], [0], [0], [1], [0, 0, 1, 1], [], []>} : vector<8x64xbf16>, vector<64x32xbf16>, vector<8x32xf32> -> vector<8x32xf32>
    %6 = vector.broadcast %1 : vector<1x32xf32> to vector<8x32xf32>
    %7 = arith.addf %5, %6 : vector<8x32xf32>
    %c0_9 = arith.constant 0 : index
    %c0_10 = arith.constant 0 : index
    %8 = vector.load %arg4[%c0_9, %c0_10] : memref<8x32xbf16, #tpu.memory_space<vmem>>, vector<8x32xbf16>
    %9 = arith.extf %8 : vector<8x32xbf16> to vector<8x32xf32>
    %10 = arith.addf %7, %9 : vector<8x32xf32>
    %cst_11 = arith.constant dense<0.000000e+00> : vector<8xf32>
    %11 = vector.multi_reduction <add>, %10, %cst_11 [1] : vector<8x32xf32> to vector<8xf32>
    %12 = vector.shape_cast %11 : vector<8xf32> to vector<8x1xf32>
    %cst_12 = arith.constant 3.125000e-02 : f32
    %13 = vector.broadcast %cst_12 : f32 to vector<8x1xf32>
    %14 = arith.mulf %12, %13 : vector<8x1xf32>
    %15 = vector.broadcast %14 : vector<8x1xf32> to vector<8x32xf32>
    %16 = arith.subf %10, %15 : vector<8x32xf32>
    %17 = arith.mulf %16, %16 : vector<8x32xf32>
    %cst_13 = arith.constant dense<0.000000e+00> : vector<8xf32>
    %18 = vector.multi_reduction <add>, %17, %cst_13 [1] : vector<8x32xf32> to vector<8xf32>
    %19 = vector.shape_cast %18 : vector<8xf32> to vector<8x1xf32>
    %cst_14 = arith.constant 3.125000e-02 : f32
    %20 = vector.broadcast %cst_14 : f32 to vector<8x1xf32>
    %21 = arith.mulf %19, %20 : vector<8x1xf32>
    %cst_15 = arith.constant 9.99999996E-13 : f32
    %22 = vector.broadcast %cst_15 : f32 to vector<8x1xf32>
    %23 = arith.addf %21, %22 : vector<8x1xf32>
    %24 = math.rsqrt %23 : vector<8x1xf32>
    %25 = vector.broadcast %24 : vector<8x1xf32> to vector<8x32xf32>
    %26 = arith.mulf %16, %25 : vector<8x32xf32>
    %27 = vector.broadcast %2 : vector<1x32xf32> to vector<8x32xf32>
    %28 = arith.mulf %26, %27 : vector<8x32xf32>
    %29 = vector.broadcast %3 : vector<1x32xf32> to vector<8x32xf32>
    %30 = arith.addf %28, %29 : vector<8x32xf32>
    %c0_16 = arith.constant 0 : index
    %c0_17 = arith.constant 0 : index
    %31 = vector.load %arg7[%c0_16, %c0_17] : memref<8x32xf32, #tpu.memory_space<vmem>>, vector<8x32xf32>
    tpu.vector_store %arg7[%c0_16, %c0_17], %30 {strides = array<i32>} : memref<8x32xf32, #tpu.memory_space<vmem>>, vector<8x32xf32>,
    return
  }
  func.func @transform_0(%arg0: i32) -> (i32, i32) {
    %c0_i32 = arith.constant 0 : i32
    %c0_i32_0 = arith.constant 0 : i32
    return %arg0, %c0_i32 : i32, i32
  }
  func.func @transform_1(%arg0: i32) -> (i32, i32) {
    %c0_i32 = arith.constant 0 : i32
    %c0_i32_0 = arith.constant 0 : i32
    %c0_i32_1 = arith.constant 0 : i32
    return %c0_i32, %c0_i32_0 : i32, i32
  }
  func.func @transform_2(%arg0: i32) -> (i32, i32) {
    %c0_i32 = arith.constant 0 : i32
    %c0_i32_0 = arith.constant 0 : i32
    %c0_i32_1 = arith.constant 0 : i32
    return %c0_i32, %c0_i32_0 : i32, i32
  }
  func.func @transform_3(%arg0: i32) -> (i32, i32) {
    %c0_i32 = arith.constant 0 : i32
    %c0_i32_0 = arith.constant 0 : i32
    return %arg0, %c0_i32 : i32, i32
  }
  func.func @transform_4(%arg0: i32) -> (i32, i32) {
    %c0_i32 = arith.constant 0 : i32
    %c0_i32_0 = arith.constant 0 : i32
    %c0_i32_1 = arith.constant 0 : i32
    return %c0_i32, %c0_i32_0 : i32, i32
  }
  func.func @transform_5(%arg0: i32) -> (i32, i32) {
    %c0_i32 = arith.constant 0 : i32
    %c0_i32_0 = arith.constant 0 : i32
    %c0_i32_1 = arith.constant 0 : i32
    return %c0_i32, %c0_i32_0 : i32, i32
  }
  func.func @transform_6(%arg0: i32) -> (i32, i32) {
    %c0_i32 = arith.constant 0 : i32
    %c0_i32_0 = arith.constant 0 : i32
    return %arg0, %c0_i32 : i32, i32
  }
}

module attributes {stable_mosaic.version = 11 : i64} {
  func.func @bert_lang_output_kernel(%arg0: i32, %arg1: memref<8x64xbf16, #tpu.memory_space<vmem>>, %arg2: memref<64x32xbf16, #tpu.memory_space<vmem>>, %arg3: memref<1x32xf32, #tpu.memory_space<vmem>>, %arg4: memref<8x32xbf16, #tpu.memory_space<vmem>>, %arg5: memref<1x32xf32, #tpu.memory_space<vmem>>, %arg6: memref<1x32xf32, #tpu.memory_space<vmem>>, %arg7: memref<8x32xf32, #tpu.memory_space<vmem>>) attributes {dimension_semantics = [#tpu.dimension_semantics<parallel>], iteration_bounds = array<i64: 2>, scalar_prefetch = 0 : i64, scratch_operands = 0 : i64, tpu.core_type = #tpu.core_type<tc>, window_params = [{transform_indices = @transform_0, window_bounds = array<i64: 8, 64>}, {pipeline_mode = #tpu.pipeline_mode<synchronous>, transform_indices = @transform_1, window_bounds = array<i64: 64, 32>}, {pipeline_mode = #tpu.pipeline_mode<synchronous>, transform_indices = @transform_2, window_bounds = array<i64: 1, 32>}, {transform_indices = @transform_3, window_bounds = array<i64: 8, 32>}, {pipeline_mode = #tpu.pipeline_mode<synchronous>, transform_indices = @transform_4, window_bounds = array<i64: 1, 32>}, {pipeline_mode = #tpu.pipeline_mode<synchronous>, transform_indices = @transform_5, window_bounds = array<i64: 1, 32>}, {transform_indices = @transform_6, window_bounds = array<i64: 8, 32>}]} {
    %c0 = arith.constant 0 : index
    %c0_0 = arith.constant 0 : index
    %0 = vector.load %arg2[%c0, %c0_0] : memref<64x32xbf16, #tpu.memory_space<vmem>>, vector<64x32xbf16>
    %c0_1 = arith.constant 0 : index
    %c0_2 = arith.constant 0 : index
    %1 = vector.load %arg3[%c0_1, %c0_2] : memref<1x32xf32, #tpu.memory_space<vmem>>, vector<1x32xf32>
    %c0_3 = arith.constant 0 : index
    %c0_4 = arith.constant 0 : index
    %2 = vector.load %arg5[%c0_3, %c0_4] : memref<1x32xf32, #tpu.memory_space<vmem>>, vector<1x32xf32>
    %c0_5 = arith.constant 0 : index
    %c0_6 = arith.constant 0 : index
    %3 = vector.load %arg6[%c0_5, %c0_6] : memref<1x32xf32, #tpu.memory_space<vmem>>, vector<1x32xf32>
    %c0_7 = arith.constant 0 : index
    %c0_8 = arith.constant 0 : index
    %4 = vector.load %arg1[%c0_7, %c0_8] : memref<8x64xbf16, #tpu.memory_space<vmem>>, vector<8x64xbf16>
    %cst = arith.constant dense<0.000000e+00> : vector<8x32xf32>
    %5 = tpu.matmul %4, %0, %cst {dimension_numbers = #tpu.dot_dimension_numbers<[1], [0], [0], [1], [0, 0, 1, 1], [], []>} : vector<8x64xbf16>, vector<64x32xbf16>, vector<8x32xf32> -> vector<8x32xf32>
    %6 = vector.broadcast %1 : vector<1x32xf32> to vector<8x32xf32>
    %7 = arith.addf %5, %6 : vector<8x32xf32>
    %c0_9 = arith.constant 0 : index
    %c0_10 = arith.constant 0 : index
    %8 = vector.load %arg4[%c0_9, %c0_10] : memref<8x32xbf16, #tpu.memory_space<vmem>>, vector<8x32xbf16>
    %9 = arith.extf %8 : vector<8x32xbf16> to vector<8x32xf32>
    %10 = arith.addf %7, %9 : vector<8x32xf32>
    %cst_11 = arith.constant dense<0.000000e+00> : vector<8xf32>
    %11 = vector.multi_reduction <add>, %10, %cst_11 [1] : vector<8x32xf32> to vector<8xf32>
    %12 = vector.shape_cast %11 : vector<8xf32> to vector<8x1xf32>
    %cst_12 = arith.constant 3.125000e-02 : f32
    %13 = vector.broadcast %cst_12 : f32 to vector<8x1xf32>
    %14 = arith.mulf %12, %13 : vector<8x1xf32>
    %15 = vector.broadcast %14 : vector<8x1xf32> to vector<8x32xf32>
    %16 = arith.subf %10, %15 : vector<8x32xf32>
    %17 = arith.mulf %16, %16 : vector<8x32xf32>
    %cst_13 = arith.constant dense<0.000000e+00> : vector<8xf32>
    %18 = vector.multi_reduction <add>, %17, %cst_13 [1] : vector<8x32xf32> to vector<8xf32>
    %19 = vector.shape_cast %18 : vector<8xf32> to vector<8x1xf32>
    %cst_14 = arith.constant 3.125000e-02 : f32
    %20 = vector.broadcast %cst_14 : f32 to vector<8x1xf32>
    %21 = arith.mulf %19, %20 : vector<8x1xf32>
    %cst_15 = arith.constant 9.99999996E-13 : f32
    %22 = vector.broadcast %cst_15 : f32 to vector<8x1xf32>
    %23 = arith.addf %21, %22 : vector<8x1xf32>
    %24 = math.rsqrt %23 : vector<8x1xf32>
    %25 = vector.broadcast %24 : vector<8x1xf32> to vector<8x32xf32>
    %26 = arith.mulf %16, %25 : vector<8x32xf32>
    %27 = vector.broadcast %2 : vector<1x32xf32> to vector<8x32xf32>
    %28 = arith.mulf %26, %27 : vector<8x32xf32>
    %29 = vector.broadcast %3 : vector<1x32xf32> to vector<8x32xf32>
    %30 = arith.addf %28, %29 : vector<8x32xf32>
    %c0_16 = arith.constant 0 : index
    %c0_17 = arith.constant 0 : index
    %31 = vector.load %arg7[%c0_16, %c0_17] : memref<8x32xf32, #tpu.memory_space<vmem>>, vector<8x32xf32>
    tpu.vector_store %arg7[%c0_16, %c0_17], %30 {strides = array<i32>} : memref<8x32xf32, #tpu.memory_space<vmem>>, vector<8x32xf32>,
    return
  }
  func.func @transform_0(%arg0: i32) -> (i32, i32) {
    %c0_i32 = arith.constant 0 : i32
    %c0_i32_0 = arith.constant 0 : i32
    return %arg0, %c0_i32 : i32, i32
  }
  func.func @transform_1(%arg0: i32) -> (i32, i32) {
    %c0_i32 = arith.constant 0 : i32
    %c0_i32_0 = arith.constant 0 : i32
    %c0_i32_1 = arith.constant 0 : i32
    return %c0_i32, %c0_i32_0 : i32, i32
  }
  func.func @transform_2(%arg0: i32) -> (i32, i32) {
    %c0_i32 = arith.constant 0 : i32
    %c0_i32_0 = arith.constant 0 : i32
    %c0_i32_1 = arith.constant 0 : i32
    return %c0_i32, %c0_i32_0 : i32, i32
  }
  func.func @transform_3(%arg0: i32) -> (i32, i32) {
    %c0_i32 = arith.constant 0 : i32
    %c0_i32_0 = arith.constant 0 : i32
    return %arg0, %c0_i32 : i32, i32
  }
  func.func @transform_4(%arg0: i32) -> (i32, i32) {
    %c0_i32 = arith.constant 0 : i32
    %c0_i32_0 = arith.constant 0 : i32
    %c0_i32_1 = arith.constant 0 : i32
    return %c0_i32, %c0_i32_0 : i32, i32
  }
  func.func @transform_5(%arg0: i32) -> (i32, i32) {
    %c0_i32 = arith.constant 0 : i32
    %c0_i32_0 = arith.constant 0 : i32
    %c0_i32_1 = arith.constant 0 : i32
    return %c0_i32, %c0_i32_0 : i32, i32
  }
  func.func @transform_6(%arg0: i32) -> (i32, i32) {
    %c0_i32 = arith.constant 0 : i32
    %c0_i32_0 = arith.constant 0 : i32
    return %arg0, %c0_i32 : i32, i32
  }
}

</mosaic_0001>

<bundles_post_ra>
// kernel: tpu_custom_call.1
= control target key start
LH: loop header
LB: loop body
LE: loop exit
PB: predicated region body
PF: predicated region fallthrough
CT: control target
= control target key end

     0   :  { %11 = vsyncpa [#allocation3], 0  ;;  %s780_s0 = inlined_call_operand.vmem [shape: bf16[16,64], index: 0, kind: input, shape index: {}]   ;;  %s781_s1 = inlined_call_operand.vmem [shape: bf16[64,32], index: 1, kind: input, shape index: {}]   ;;  %s782_s2 = inlined_call_operand.vmem [shape: f32[1,32], index: 2, kind: input, shape index: {}]   ;;  %s783_s3 = inlined_call_operand.vmem [shape: bf16[16,32], index: 3, kind: input, shape index: {}]   ;;  %s784_s4 = inlined_call_operand.vmem [shape: f32[1,32], index: 4, kind: input, shape index: {}]   ;;  %s785_s5 = inlined_call_operand.vmem [shape: f32[1,32], index: 5, kind: input, shape index: {}]   ;;  %s786_s6 = inlined_call_operand.hbm [shape: f32[16,32], index: 6, kind: output, shape index: {}]  }
   0x1   :  { %13 = vsyncpa [#allocation3 + $0x1], 0  ;;  %s653_s21 = smov 0   ;;  %s655_s22 = smov 0  }
   0x2   :  { %s657_s23 = smov 0   ;;  %s659_s24 = smov 0  }
   0x3 LB: > { %s674_s25 = sadd.s32 4294967295, %s613_s24   ;;  %s468_s26 = sadd.s32 4294967294, %s613_s24   ;;  %s613_s24 = sphi %s659_s24, %s792_s24   ;;  %s609_s23 = sphi %s657_s23, %s791_s23   ;;  %s605_s22 = sphi %s655_s22, %s790_s22   ;;  %s601_s21 = sphi %s653_s21, %s789_s21  }
   0x4   : > { %s678_s27 = sadd.s32 1, %s613_s24   ;;  %s162_s28 = sadd.s32 1, %s609_s23 }
   0x5   : > { %s159_s29 = ssub.s32 %s613_s24, %s678_s27  ;;  %p172_p0 = scmp.ne.s32.totalorder %s609_s23, %s605_s22 }
   0x6   : > { %p160_p1 = scmp.eq.s32.totalorder %s159_s29, 0  ;;  %p173_p2 = scmp.eq.s32.totalorder %s674_s25, 1 }
   0x7   : > { %p178_p3 = scmp.ne.s32.totalorder %s605_s22, %s601_s21  ;;  %p179_p4 = scmp.eq.s32.totalorder %s468_s26, 1 }
   0x8   : > { %s689_s30 = scalar_select %p160_p1, %s609_s23, %s162_s28  }
   0x9   : > { %p691_p5 = por %p173_p2, %p172_p0  ;;  %p695_p6 = por %p179_p4, %p178_p3 }
   0xa   : > { %p471_p7 = scmp.ge.s32.totalorder %s613_s24, 1  ;;  %p223_p8 = scmp.lt.s32.totalorder %s613_s24, 3 }
   0xc   : > { %p224_p9 = pnand %p471_p7, %p223_p8 }
   0xd   : > { %v545_v0 = vld [vmem:[%s781_s1] sm:$0xff] (!%p224_p9)   ;;  %v615_v1 = vmov (!%p224_p9), 0.0   ;;  %v546_v2 = vld [vmem:[%s781_s1 + $0x8] sm:$0xff] (!%p224_p9)   ;;  %vm616_vm0 = vmmov (!%p224_p9), 0   ;;  %p256_p10 = scmp.lt.s32.totalorder (!%p224_p9), %s674_s25, 1  ;;  %v547_v3 = vld [vmem:[%s781_s1 + $0x10] sm:$0xff] (!%p224_p9)  }
   0xe   : > { %227 = sbr.rel (%p224_p9) target bundleno = 573 (0x23d), region = 44  ;;  %492 = vmatprep.subr.bf16.mxu0 (!%p224_p9), %v615_v1  ;;  %500 = vmatprep.mubr.msk.bf16.mxu0 (!%p224_p9), %vm616_vm0, %v615_v1  ;;  %v548_v4 = vld [vmem:[%s781_s1 + $0x18] sm:$0xff] (!%p224_p9)   ;;  %vm307_vm1 = vcmask (!%p224_p9), 523264   ;;  %v475_v7 = vld [vmem:[%s782_s2] ss:$0 sm:$0xff] (!%p224_p9)  ;;  %vm354_vm2 = vcmask (!%p224_p9), 261120  }
   0xf   : > { %493 = vmatpush3.bf16.msra.mxu0 (!%p224_p9), %v545_v0  ;;  %s253_s12 = sand.u32 (!%p224_p9), 1, %s605_s22   ;;  %v481_v25 = vld [vmem:[%s784_s4] ss:$0 sm:$0xff] (!%p224_p9)  ;;  %s484_s18 = sshll.u32 (!%p224_p9), %s674_s25, 7 }
  0x10   : > { %494 = vmatprep.subr.bf16.mxu0 (!%p224_p9), %v615_v1  ;;  %v482_v27 = vld [vmem:[%s785_s5] ss:$0 sm:$0xff] (!%p224_p9)  ;;  %s737_s29 = scalar_lea.hbm (!%p224_p9), %s786_s6, %s484_s18 }
  0x13   : > { %495 = vmatpush3.bf16.msra.mxu0 (!%p224_p9), %v546_v2 }
  0x14   : > { %496 = vmatprep.subr.bf16.mxu0 (!%p224_p9), %v615_v1 }
  0x15   : > { %s257_s13 = scalar_select %p256_p10, %s674_s25, 1 }
  0x16   : > { %s617_s25 = smov [#allocation2]  }
  0x17   : > { %s473_s16 = sshll.u32 %s257_s13, 2  ;;  %497 = vmatpush3.bf16.msra.mxu0 %v547_v3  ;;  %s472_s13 = sshll.u32 %s253_s12, 3 }
  0x18   : > { %498 = vmatprep.subr.bf16.mxu0 %v615_v1  ;;  %s259_s26 = scalar_lea.vmem %s780_s0, %s473_s16  ;;  %s263_s9 = scalar_lea.vmem %s783_s3, %s473_s16 }
  0x19   : > { %v276_v5 = vld [vmem:[%s259_s26] sm:$0xf]  ;;  %s255_s19 = scalar_lea.vmem [#allocation2], %s472_s13  ;;  %s555_s11 = sshll.u32 %s617_s25, 4  ;;  %s556_s11 = int_to_ptr.vmem [resolvable:$false] %s555_s11 }
  0x1a   : > { %v351_v6 = vld [vmem:[%s263_s9] sm:$0xf]  ;;  %s397_s20 = sshll.u32 %s255_s19, 4  ;;  %s384_s9 = scalar_lea.sflag [#allocation3], %s253_s12  ;;  %s739_s20 = int_to_ptr.vmem [resolvable:$true] %s397_s20 }
  0x1b   : > { %499 = vmatpush3.bf16.msra.mxu0 %v548_v4  ;;  %v352_v8 = vunpack.c.l.bf16 %v351_v6  ;;  %s551_s10 = scalar_lea.vmem %s739_s20, 128  ;;  %s557_s13 = scalar_lea.vmem %s556_s11, 256 }
  0x1c   : > { %p552_p11 = scmp.ne.s32.totalorder %s739_s20, %s551_s10  ;;  %p558_p0 = scmp.lt.s32.totalorder %s739_s20, %s556_s11 }
  0x1d   : > { %p559_p1 = scmp.lt.s32.totalorder %s557_s13, %s551_s10 }
  0x1e   : > { %501 = vmatmul.mubr.msk.bf16.vlgmr.msra.gmra.mrb[0].mxu0 %vm307_vm1, %v276_v5  ;;  %p553_p12 = pnand %p552_p11, %p691_p5 }
  0x1f   : > { %p560_p2 = por %p559_p1, %p558_p0 }
  0x20   : > { %p554_p13 = pneg %p553_p12 }
  0x22   : > { %p561_p3 = pnand %p560_p2, %p554_p13 }
  0xf1   : > { %v345_v9 = vpop.f32.mrb[0].mxu0 }
  0xf2   : > { %v346_v10 = vadd.f32 %v475_v7, %v345_v9  ;;  %v502_v11 = vpop.f32.mrb[1].mxu0 }
  0xf3   : > { %v348_v12 = vpop.f32.mrb[2].mxu0 }
  0xf4   : > { %v503_v13 = vpop.f32.mrb[3].mxu0  ;;  %v353_v14 = vadd.f32 %v352_v8, %v346_v10 }
  0xf6   : > { %v355_v15 = vsel %vm354_vm2, %v353_v14, 0.0 }
  0xf7   : > { %356 = vadd.xlane.f32.xlu0 %v355_v15 }
 0x184   : > { %v357_v16 = vpop.xlane.xlu0 %356 }
 0x185   : > { %v358_v17 = vmul.f32 0.03125, %v357_v16 }
 0x187   : > { %v359_v18 = vsub.f32 %v353_v14, %v358_v17 }
 0x189   : > { %v360_v19 = vmul.f32 %v359_v18, %v359_v18 }
 0x18b   : > { %v361_v20 = vsel %vm354_vm2, %v360_v19, 0.0 }
 0x18c   : > { %362 = vadd.xlane.f32.xlu0 %v361_v20 }
 0x219   : > { %v363_v21 = vpop.xlane.xlu0 %362 }
 0x21a   : > { %v364_v22 = vmul.f32 0.03125, %v363_v21 }
 0x21c   : > { %v365_v23 = vadd.f32 1e-12, %v364_v22 }
 0x21e   : > { %549 = vrsqrt.f32 %v365_v23 }
 0x228   : > { %v550_v24 = vpop.eup %549 }
 0x229   : > { %v367_v26 = vmul.f32 %v550_v24, %v359_v18 }
 0x22b   : > { %v374_v28 = vmul.f32 %v481_v25, %v367_v26 }
 0x22d   : > { %v381_v29 = vadd.f32 %v482_v27, %v374_v28 }
 0x22f   : > { %382 = vst.msk [vmem:[%s255_s19] sm:$0xff] %vm354_vm2, %v381_v29 }
 0x230   : > { %564 = shalt.err (!%p561_p3)
}
 0x231   : > { %s565_s12 = scalar_lea.hbm %s737_s29, 128  ;;  %s569_s16 = scalar_lea.hbm %s786_s6, 256 }
 0x232   : > { %p566_p4 = scmp.ne.s32.totalorder %s737_s29, %s565_s12  ;;  %p570_p9 = scmp.lt.u32.totalorder %s737_s29, %s786_s6 }
 0x233   : > { %p571_p10 = scmp.lt.u32.totalorder %s569_s16, %s565_s12  ;;  %p573_p12 = scmp.lt.u32.totalorder %s565_s12, %s737_s29 }
 0x234   : > { %p567_p7 = pnand %p566_p4, %p691_p5 }
 0x235   : > { %p572_p11 = por %p571_p10, %p570_p9 }
 0x236   : > { %p568_p8 = pneg %p567_p7 }
 0x237   : > { %p574_p13 = por %p573_p12, %p572_p11 }
 0x239   : > { %p575_p0 = pnand %p574_p13, %p568_p8 }
 0x23b   : > { %578 = shalt.err (!%p575_p0)
}
 0x23c   : > { %504 = dma.vmem_to_hbm [thread:$0]  (%p691_p5), %s739_s20, 128, %s737_s29, %s384_s9  }
 0x23d PF: > { %p510_p1 = scmp.ge.s32.totalorder %s613_s24, 2  ;;  %s409_s19 = sand.u32 1, %s601_s21  }
 0x23e   : > { %s410_s26 = scalar_lea.sflag [#allocation3], %s409_s19 }
 0x23f   : > { %p507_p2 = pnand %p510_p1, %p695_p6 }
 0x241   : > { %596 = dma.done.wait (!%p507_p2), %s410_s26, 128  }
 0x242   : > { %598 = vsyncadd (!%p507_p2), %s410_s26, 4294967168  ;;  %p16_p3 = scmp.ge.s32.totalorder %s678_s27, 4   ;;  %s789_s21 = smov %s605_s22 }
 0x243   : > { %s790_s22 = smov %s609_s23  ;;  %s791_s23 = smov %s689_s30 }
 0x244   : > { %s792_s24 = smov %s678_s27  ;;  %18 = sbr.rel (!%p16_p3) target bundleno = 3 (0x3), region = 82 }
 0x24b   :  { %415 = vsyncpa [#allocation3], 1 }
 0x24c   :  { %417 = vsyncpa [#allocation3 + $0x1], 1 }

// kernel: tpu_custom_call.1
= control target key start
LH: loop header
LB: loop body
LE: loop exit
PB: predicated region body
PF: predicated region fallthrough
CT: control target
= control target key end

     0   :  { %11 = vsyncpa [#allocation3], 0  ;;  %s780_s0 = inlined_call_operand.vmem [shape: bf16[16,64], index: 0, kind: input, shape index: {}]   ;;  %s781_s1 = inlined_call_operand.vmem [shape: bf16[64,32], index: 1, kind: input, shape index: {}]   ;;  %s782_s2 = inlined_call_operand.vmem [shape: f32[1,32], index: 2, kind: input, shape index: {}]   ;;  %s783_s3 = inlined_call_operand.vmem [shape: bf16[16,32], index: 3, kind: input, shape index: {}]   ;;  %s784_s4 = inlined_call_operand.vmem [shape: f32[1,32], index: 4, kind: input, shape index: {}]   ;;  %s785_s5 = inlined_call_operand.vmem [shape: f32[1,32], index: 5, kind: input, shape index: {}]   ;;  %s786_s6 = inlined_call_operand.hbm [shape: f32[16,32], index: 6, kind: output, shape index: {}]  }
   0x1   :  { %13 = vsyncpa [#allocation3 + $0x1], 0  ;;  %s653_s21 = smov 0   ;;  %s655_s22 = smov 0  }
   0x2   :  { %s657_s23 = smov 0   ;;  %s659_s24 = smov 0  }
   0x3 LB: > { %s674_s25 = sadd.s32 4294967295, %s613_s24   ;;  %s468_s26 = sadd.s32 4294967294, %s613_s24   ;;  %s613_s24 = sphi %s659_s24, %s792_s24   ;;  %s609_s23 = sphi %s657_s23, %s791_s23   ;;  %s605_s22 = sphi %s655_s22, %s790_s22   ;;  %s601_s21 = sphi %s653_s21, %s789_s21  }
   0x4   : > { %s678_s27 = sadd.s32 1, %s613_s24   ;;  %s162_s28 = sadd.s32 1, %s609_s23 }
   0x5   : > { %s159_s29 = ssub.s32 %s613_s24, %s678_s27  ;;  %p172_p0 = scmp.ne.s32.totalorder %s609_s23, %s605_s22 }
   0x6   : > { %p160_p1 = scmp.eq.s32.totalorder %s159_s29, 0  ;;  %p173_p2 = scmp.eq.s32.totalorder %s674_s25, 1 }
   0x7   : > { %p178_p3 = scmp.ne.s32.totalorder %s605_s22, %s601_s21  ;;  %p179_p4 = scmp.eq.s32.totalorder %s468_s26, 1 }
   0x8   : > { %s689_s30 = scalar_select %p160_p1, %s609_s23, %s162_s28  }
   0x9   : > { %p691_p5 = por %p173_p2, %p172_p0  ;;  %p695_p6 = por %p179_p4, %p178_p3 }
   0xa   : > { %p471_p7 = scmp.ge.s32.totalorder %s613_s24, 1  ;;  %p223_p8 = scmp.lt.s32.totalorder %s613_s24, 3 }
   0xc   : > { %p224_p9 = pnand %p471_p7, %p223_p8 }
   0xd   : > { %v545_v0 = vld [vmem:[%s781_s1] sm:$0xff] (!%p224_p9)   ;;  %v615_v1 = vmov (!%p224_p9), 0.0   ;;  %v546_v2 = vld [vmem:[%s781_s1 + $0x8] sm:$0xff] (!%p224_p9)   ;;  %vm616_vm0 = vmmov (!%p224_p9), 0   ;;  %p256_p10 = scmp.lt.s32.totalorder (!%p224_p9), %s674_s25, 1  ;;  %v547_v3 = vld [vmem:[%s781_s1 + $0x10] sm:$0xff] (!%p224_p9)  }
   0xe   : > { %227 = sbr.rel (%p224_p9) target bundleno = 573 (0x23d), region = 44  ;;  %492 = vmatprep.subr.bf16.mxu0 (!%p224_p9), %v615_v1  ;;  %500 = vmatprep.mubr.msk.bf16.mxu0 (!%p224_p9), %vm616_vm0, %v615_v1  ;;  %v548_v4 = vld [vmem:[%s781_s1 + $0x18] sm:$0xff] (!%p224_p9)   ;;  %vm307_vm1 = vcmask (!%p224_p9), 523264   ;;  %v475_v7 = vld [vmem:[%s782_s2] ss:$0 sm:$0xff] (!%p224_p9)  ;;  %vm354_vm2 = vcmask (!%p224_p9), 261120  }
   0xf   : > { %493 = vmatpush3.bf16.msra.mxu0 (!%p224_p9), %v545_v0  ;;  %s253_s12 = sand.u32 (!%p224_p9), 1, %s605_s22   ;;  %v481_v25 = vld [vmem:[%s784_s4] ss:$0 sm:$0xff] (!%p224_p9)  ;;  %s484_s18 = sshll.u32 (!%p224_p9), %s674_s25, 7 }
  0x10   : > { %494 = vmatprep.subr.bf16.mxu0 (!%p224_p9), %v615_v1  ;;  %v482_v27 = vld [vmem:[%s785_s5] ss:$0 sm:$0xff] (!%p224_p9)  ;;  %s737_s29 = scalar_lea.hbm (!%p224_p9), %s786_s6, %s484_s18 }
  0x13   : > { %495 = vmatpush3.bf16.msra.mxu0 (!%p224_p9), %v546_v2 }
  0x14   : > { %496 = vmatprep.subr.bf16.mxu0 (!%p224_p9), %v615_v1 }
  0x15   : > { %s257_s13 = scalar_select %p256_p10, %s674_s25, 1 }
  0x16   : > { %s617_s25 = smov [#allocation2]  }
  0x17   : > { %s473_s16 = sshll.u32 %s257_s13, 2  ;;  %497 = vmatpush3.bf16.msra.mxu0 %v547_v3  ;;  %s472_s13 = sshll.u32 %s253_s12, 3 }
  0x18   : > { %498 = vmatprep.subr.bf16.mxu0 %v615_v1  ;;  %s259_s26 = scalar_lea.vmem %s780_s0, %s473_s16  ;;  %s263_s9 = scalar_lea.vmem %s783_s3, %s473_s16 }
  0x19   : > { %v276_v5 = vld [vmem:[%s259_s26] sm:$0xf]  ;;  %s255_s19 = scalar_lea.vmem [#allocation2], %s472_s13  ;;  %s555_s11 = sshll.u32 %s617_s25, 4  ;;  %s556_s11 = int_to_ptr.vmem [resolvable:$false] %s555_s11 }
  0x1a   : > { %v351_v6 = vld [vmem:[%s263_s9] sm:$0xf]  ;;  %s397_s20 = sshll.u32 %s255_s19, 4  ;;  %s384_s9 = scalar_lea.sflag [#allocation3], %s253_s12  ;;  %s739_s20 = int_to_ptr.vmem [resolvable:$true] %s397_s20 }
  0x1b   : > { %499 = vmatpush3.bf16.msra.mxu0 %v548_v4  ;;  %v352_v8 = vunpack.c.l.bf16 %v351_v6  ;;  %s551_s10 = scalar_lea.vmem %s739_s20, 128  ;;  %s557_s13 = scalar_lea.vmem %s556_s11, 256 }
  0x1c   : > { %p552_p11 = scmp.ne.s32.totalorder %s739_s20, %s551_s10  ;;  %p558_p0 = scmp.lt.s32.totalorder %s739_s20, %s556_s11 }
  0x1d   : > { %p559_p1 = scmp.lt.s32.totalorder %s557_s13, %s551_s10 }
  0x1e   : > { %501 = vmatmul.mubr.msk.bf16.vlgmr.msra.gmra.mrb[0].mxu0 %vm307_vm1, %v276_v5  ;;  %p553_p12 = pnand %p552_p11, %p691_p5 }
  0x1f   : > { %p560_p2 = por %p559_p1, %p558_p0 }
  0x20   : > { %p554_p13 = pneg %p553_p12 }
  0x22   : > { %p561_p3 = pnand %p560_p2, %p554_p13 }
  0xf1   : > { %v345_v9 = vpop.f32.mrb[0].mxu0 }
  0xf2   : > { %v346_v10 = vadd.f32 %v475_v7, %v345_v9  ;;  %v502_v11 = vpop.f32.mrb[1].mxu0 }
  0xf3   : > { %v348_v12 = vpop.f32.mrb[2].mxu0 }
  0xf4   : > { %v503_v13 = vpop.f32.mrb[3].mxu0  ;;  %v353_v14 = vadd.f32 %v352_v8, %v346_v10 }
  0xf6   : > { %v355_v15 = vsel %vm354_vm2, %v353_v14, 0.0 }
  0xf7   : > { %356 = vadd.xlane.f32.xlu0 %v355_v15 }
 0x184   : > { %v357_v16 = vpop.xlane.xlu0 %356 }
 0x185   : > { %v358_v17 = vmul.f32 0.03125, %v357_v16 }
 0x187   : > { %v359_v18 = vsub.f32 %v353_v14, %v358_v17 }
 0x189   : > { %v360_v19 = vmul.f32 %v359_v18, %v359_v18 }
 0x18b   : > { %v361_v20 = vsel %vm354_vm2, %v360_v19, 0.0 }
 0x18c   : > { %362 = vadd.xlane.f32.xlu0 %v361_v20 }
 0x219   : > { %v363_v21 = vpop.xlane.xlu0 %362 }
 0x21a   : > { %v364_v22 = vmul.f32 0.03125, %v363_v21 }
 0x21c   : > { %v365_v23 = vadd.f32 1e-12, %v364_v22 }
 0x21e   : > { %549 = vrsqrt.f32 %v365_v23 }
 0x228   : > { %v550_v24 = vpop.eup %549 }
 0x229   : > { %v367_v26 = vmul.f32 %v550_v24, %v359_v18 }
 0x22b   : > { %v374_v28 = vmul.f32 %v481_v25, %v367_v26 }
 0x22d   : > { %v381_v29 = vadd.f32 %v482_v27, %v374_v28 }
 0x22f   : > { %382 = vst.msk [vmem:[%s255_s19] sm:$0xff] %vm354_vm2, %v381_v29 }
 0x230   : > { %564 = shalt.err (!%p561_p3)
}
 0x231   : > { %s565_s12 = scalar_lea.hbm %s737_s29, 128  ;;  %s569_s16 = scalar_lea.hbm %s786_s6, 256 }
 0x232   : > { %p566_p4 = scmp.ne.s32.totalorder %s737_s29, %s565_s12  ;;  %p570_p9 = scmp.lt.u32.totalorder %s737_s29, %s786_s6 }
 0x233   : > { %p571_p10 = scmp.lt.u32.totalorder %s569_s16, %s565_s12  ;;  %p573_p12 = scmp.lt.u32.totalorder %s565_s12, %s737_s29 }
 0x234   : > { %p567_p7 = pnand %p566_p4, %p691_p5 }
 0x235   : > { %p572_p11 = por %p571_p10, %p570_p9 }
 0x236   : > { %p568_p8 = pneg %p567_p7 }
 0x237   : > { %p574_p13 = por %p573_p12, %p572_p11 }
 0x239   : > { %p575_p0 = pnand %p574_p13, %p568_p8 }
 0x23b   : > { %578 = shalt.err (!%p575_p0)
}
 0x23c   : > { %504 = dma.vmem_to_hbm [thread:$0]  (%p691_p5), %s739_s20, 128, %s737_s29, %s384_s9  }
 0x23d PF: > { %p510_p1 = scmp.ge.s32.totalorder %s613_s24, 2  ;;  %s409_s19 = sand.u32 1, %s601_s21  }
 0x23e   : > { %s410_s26 = scalar_lea.sflag [#allocation3], %s409_s19 }
 0x23f   : > { %p507_p2 = pnand %p510_p1, %p695_p6 }
 0x241   : > { %596 = dma.done.wait (!%p507_p2), %s410_s26, 128  }
 0x242   : > { %598 = vsyncadd (!%p507_p2), %s410_s26, 4294967168  ;;  %p16_p3 = scmp.ge.s32.totalorder %s678_s27, 4   ;;  %s789_s21 = smov %s605_s22 }
 0x243   : > { %s790_s22 = smov %s609_s23  ;;  %s791_s23 = smov %s689_s30 }
 0x244   : > { %s792_s24 = smov %s678_s27  ;;  %18 = sbr.rel (!%p16_p3) target bundleno = 3 (0x3), region = 82 }
 0x24b   :  { %415 = vsyncpa [#allocation3], 1 }
 0x24c   :  { %417 = vsyncpa [#allocation3 + $0x1], 1 }

</bundles_post_ra>
